<compile_context>
chip_gen: v7x
topology: tpu7x:2x2x1
jax: 0.10.0
libtpu: 0.0.40
codegen_flags: <defaults>
</compile_context>

<pallas_src>
import functools

import jax
import jax.numpy as jnp
from jax.experimental import pallas as pl
from jax.experimental.pallas import tpu as pltpu

LOG_SIG_MIN_VALUES = -5.0
LOG_STD_MAX_VALUES = 2.0

LANE = 128
SUBLANE = 8


def _round_up(x: int, m: int) -> int:
    return ((x + m - 1) // m) * m


def _actor_kernel(state_ref, w1_ref, b1_ref, w2_ref, b2_ref, w3_ref, b3_ref,
                  logstd_ref, out_ref, *, a_pad: int):
    x = state_ref[...]

    # trunk: Linear -> ReLU -> Linear -> ReLU -> Linear  (utils.MLP, l=2)
    h = jnp.dot(x, w1_ref[...], preferred_element_type=jnp.float32) + b1_ref[...]
    h = jnp.maximum(h, 0.0)
    h = jnp.dot(h, w2_ref[...], preferred_element_type=jnp.float32) + b2_ref[...]
    h = jnp.maximum(h, 0.0)
    mean = jnp.dot(h, w3_ref[...], preferred_element_type=jnp.float32) + b3_ref[...]

    # std = exp(clamp(log_std)); state-independent, broadcast across the batch
    # tile so the packed output slab stays lane-dense.
    ls = jnp.clip(logstd_ref[...], LOG_SIG_MIN_VALUES, LOG_STD_MAX_VALUES)
    std = jnp.exp(ls)
    bm = mean.shape[0]

    # packed lane-dense output: [:, :a_pad] = mean, [:, a_pad:] = std
    out_ref[:, :a_pad] = mean
    out_ref[:, a_pad:] = jnp.broadcast_to(std, (bm, a_pad))


def gaussian_actor_forward(state, params, log_std, *, batch_tile: int | None = None):
    """Fused GaussianActor.forward. Returns (mean[B,A], std[A])."""
    B, S = state.shape
    H = params["w1"].shape[1]
    A = params["w3"].shape[1]

    s_pad = _round_up(S, LANE)
    h_pad = _round_up(H, LANE)
    a_pad = _round_up(A, LANE)

    # Zero-pad feature dims to lane width (128).  Zero padding is exact for
    # matmul / ReLU.  In production this would be done once at parameter-prep
    # time (and weights cast to bf16 on v6e/v7x for large H), not per call.
    def pad2(x, rows, cols):
        return jnp.pad(x, ((0, rows - x.shape[0]), (0, cols - x.shape[1])))

    state_p = pad2(state.astype(jnp.float32), B, s_pad)
    w1 = pad2(params["w1"], s_pad, h_pad); b1 = pad2(params["b1"], 1, h_pad)
    w2 = pad2(params["w2"], h_pad, h_pad); b2 = pad2(params["b2"], 1, h_pad)
    w3 = pad2(params["w3"], h_pad, a_pad); b3 = pad2(params["b3"], 1, a_pad)
    ls = pad2(log_std.reshape(1, A).astype(jnp.float32), 1, a_pad)

    # Batch tiling: sublane-aligned, >=2 grid steps when possible (v7x megacore).
    if batch_tile is None:
        if B % SUBLANE == 0:
            bm = min(B, 128)
            if bm == B and B % (2 * SUBLANE) == 0:
                bm = B // 2
            while B % bm:
                bm -= SUBLANE
        else:
            bm = B
    else:
        bm = batch_tile
    assert B % bm == 0, (B, bm)
    grid = (B // bm,)

    def batch_spec(cols):
        return pl.BlockSpec((bm, cols), lambda i: (i, 0))

    def const_spec(shape):
        # constant index_map -> block stays resident across grid steps
        return pl.BlockSpec(shape, lambda i: (0, 0))

    in_specs = [
        batch_spec(s_pad),                                   # state
        const_spec((s_pad, h_pad)), const_spec((1, h_pad)),  # w1, b1
        const_spec((h_pad, h_pad)), const_spec((1, h_pad)),  # w2, b2
        const_spec((h_pad, a_pad)), const_spec((1, a_pad)),  # w3, b3
        const_spec((1, a_pad)),                              # log_std
    ]
    out_specs = batch_spec(2 * a_pad)
    out_shape = jax.ShapeDtypeStruct((B, 2 * a_pad), jnp.float32)

    kernel = functools.partial(_actor_kernel, a_pad=a_pad)
    packed = pl.pallas_call(
        kernel,
        out_shape=out_shape,
        grid_spec=pltpu.PrefetchScalarGridSpec(
            num_scalar_prefetch=0,
            grid=grid,
            in_specs=in_specs,
            out_specs=out_specs,
        ),
        compiler_params=pltpu.CompilerParams(
            dimension_semantics=("parallel",),
            vmem_limit_bytes=32 * 1024 * 1024,
        ),
    )(state_p, w1, b1, w2, b2, w3, b3, ls)

    mean = packed[:, :A]
    std = packed[0, a_pad:a_pad + A]
    return mean, std


def init_params(key, state_dim, action_dim, hidden_dim):
    """Deterministic synthetic parameter init (stand-in for utils.weight_init).

    Weights stored (in_features, out_features) so the kernel computes
    y = x @ W + b directly (transpose of nn.Linear's layout, numerically identical).
    """
    ks = jax.random.split(key, 6)

    def lin(kw, kb, fan_in, fan_out):
        w = jax.random.normal(kw, (fan_in, fan_out), jnp.float32) / jnp.sqrt(fan_in)
        b = 0.01 * jax.random.normal(kb, (1, fan_out), jnp.float32)
        return w, b

    w1, b1 = lin(ks[0], ks[1], state_dim, hidden_dim)
    w2, b2 = lin(ks[2], ks[3], hidden_dim, hidden_dim)
    w3, b3 = lin(ks[4], ks[5], hidden_dim, action_dim)
    return dict(w1=w1, b1=b1, w2=w2, b2=b2, w3=w3, b3=b3)


if __name__ == "__main__":
    key = jax.random.PRNGKey(0)
    k_state, k_params, k_ls = jax.random.split(key, 3)

    B, state_dim, action_dim, hidden_dim = 16, 16, 4, 32
    state = jax.random.normal(k_state, (B, state_dim), jnp.float32)
    params = init_params(k_params, state_dim, action_dim, hidden_dim)
    # nn.Parameter(torch.zeros(action_dim)) is zero-init; perturb slightly so
    # the clamp/exp path is exercised nontrivially.
    log_std = 0.5 * jax.random.normal(k_ls, (action_dim,), jnp.float32)

    mean, std = gaussian_actor_forward(state, params, log_std)
    jax.block_until_ready((mean, std))

    # pure-JAX reference of GaussianActor.forward's distribution parameters
    h = jnp.maximum(state @ params["w1"] + params["b1"], 0.0)
    h = jnp.maximum(h @ params["w2"] + params["b2"], 0.0)
    r_mean = h @ params["w3"] + params["b3"]
    r_std = jnp.exp(jnp.clip(log_std, LOG_SIG_MIN_VALUES, LOG_STD_MAX_VALUES))

    assert mean.shape == (B, action_dim) and std.shape == (action_dim,)
    assert jnp.allclose(mean, r_mean, atol=1e-4), float(jnp.max(jnp.abs(mean - r_mean)))
    assert jnp.allclose(std, r_std, atol=1e-5), float(jnp.max(jnp.abs(std - r_std)))

    # TODO(synk): MultivariateNormal(mean, scale_tril=diag(std)) construction and
    # self.infos bookkeeping have no Pallas equivalent; the kernel returns (mean, std).
    print("KERNEL_OK")
</pallas_src>

<mosaic_0001>
module attributes {stable_mosaic.version = 11 : i64} {
  func.func @_actor_kernel(%arg0: i32, %arg1: memref<8x128xf32, #tpu.memory_space<vmem>>, %arg2: memref<128x128xf32, #tpu.memory_space<vmem>>, %arg3: memref<1x128xf32, #tpu.memory_space<vmem>>, %arg4: memref<128x128xf32, #tpu.memory_space<vmem>>, %arg5: memref<1x128xf32, #tpu.memory_space<vmem>>, %arg6: memref<128x128xf32, #tpu.memory_space<vmem>>, %arg7: memref<1x128xf32, #tpu.memory_space<vmem>>, %arg8: memref<1x128xf32, #tpu.memory_space<vmem>>, %arg9: memref<8x256xf32, #tpu.memory_space<vmem>>) attributes {dimension_semantics = [#tpu.dimension_semantics<parallel>], iteration_bounds = array<i64: 2>, scalar_prefetch = 0 : i64, scratch_operands = 0 : i64, tpu.core_type = #tpu.core_type<tc>, window_params = [{transform_indices = @transform_0, window_bounds = array<i64: 8, 128>}, {pipeline_mode = #tpu.pipeline_mode<synchronous>, transform_indices = @transform_1, window_bounds = array<i64: 128, 128>}, {pipeline_mode = #tpu.pipeline_mode<synchronous>, transform_indices = @transform_2, window_bounds = array<i64: 1, 128>}, {pipeline_mode = #tpu.pipeline_mode<synchronous>, transform_indices = @transform_3, window_bounds = array<i64: 128, 128>}, {pipeline_mode = #tpu.pipeline_mode<synchronous>, transform_indices = @transform_4, window_bounds = array<i64: 1, 128>}, {pipeline_mode = #tpu.pipeline_mode<synchronous>, transform_indices = @transform_5, window_bounds = array<i64: 128, 128>}, {pipeline_mode = #tpu.pipeline_mode<synchronous>, transform_indices = @transform_6, window_bounds = array<i64: 1, 128>}, {pipeline_mode = #tpu.pipeline_mode<synchronous>, transform_indices = @transform_7, window_bounds = array<i64: 1, 128>}, {transform_indices = @transform_8, window_bounds = array<i64: 8, 256>}]} {
    %c0 = arith.constant 0 : index
    %c0_0 = arith.constant 0 : index
    %0 = vector.load %arg1[%c0, %c0_0] : memref<8x128xf32, #tpu.memory_space<vmem>>, vector<8x128xf32>
    %c0_1 = arith.constant 0 : index
    %c0_2 = arith.constant 0 : index
    %1 = vector.load %arg2[%c0_1, %c0_2] : memref<128x128xf32, #tpu.memory_space<vmem>>, vector<128x128xf32>
    %cst = arith.constant dense<0.000000e+00> : vector<8x128xf32>
    %2 = tpu.matmul %0, %1, %cst {dimension_numbers = #tpu.dot_dimension_numbers<[1], [0], [0], [1], [0, 0, 1, 1], [], []>} : vector<8x128xf32>, vector<128x128xf32>, vector<8x128xf32> -> vector<8x128xf32>
    %c0_3 = arith.constant 0 : index
    %c0_4 = arith.constant 0 : index
    %3 = vector.load %arg3[%c0_3, %c0_4] : memref<1x128xf32, #tpu.memory_space<vmem>>, vector<1x128xf32>
    %4 = vector.broadcast %3 : vector<1x128xf32> to vector<8x128xf32>
    %5 = arith.addf %2, %4 : vector<8x128xf32>
    %cst_5 = arith.constant 0.000000e+00 : f32
    %6 = vector.broadcast %cst_5 : f32 to vector<8x128xf32>
    %7 = arith.maximumf %5, %6 : vector<8x128xf32>
    %c0_6 = arith.constant 0 : index
    %c0_7 = arith.constant 0 : index
    %8 = vector.load %arg4[%c0_6, %c0_7] : memref<128x128xf32, #tpu.memory_space<vmem>>, vector<128x128xf32>
    %cst_8 = arith.constant dense<0.000000e+00> : vector<8x128xf32>
    %9 = tpu.matmul %7, %8, %cst_8 {dimension_numbers = #tpu.dot_dimension_numbers<[1], [0], [0], [1], [0, 0, 1, 1], [], []>} : vector<8x128xf32>, vector<128x128xf32>, vector<8x128xf32> -> vector<8x128xf32>
    %c0_9 = arith.constant 0 : index
    %c0_10 = arith.constant 0 : index
    %10 = vector.load %arg5[%c0_9, %c0_10] : memref<1x128xf32, #tpu.memory_space<vmem>>, vector<1x128xf32>
    %11 = vector.broadcast %10 : vector<1x128xf32> to vector<8x128xf32>
    %12 = arith.addf %9, %11 : vector<8x128xf32>
    %cst_11 = arith.constant 0.000000e+00 : f32
    %13 = vector.broadcast %cst_11 : f32 to vector<8x128xf32>
    %14 = arith.maximumf %12, %13 : vector<8x128xf32>
    %c0_12 = arith.constant 0 : index
    %c0_13 = arith.constant 0 : index
    %15 = vector.load %arg6[%c0_12, %c0_13] : memref<128x128xf32, #tpu.memory_space<vmem>>, vector<128x128xf32>
    %cst_14 = arith.constant dense<0.000000e+00> : vector<8x128xf32>
    %16 = tpu.matmul %14, %15, %cst_14 {dimension_numbers = #tpu.dot_dimension_numbers<[1], [0], [0], [1], [0, 0, 1, 1], [], []>} : vector<8x128xf32>, vector<128x128xf32>, vector<8x128xf32> -> vector<8x128xf32>
    %c0_15 = arith.constant 0 : index
    %c0_16 = arith.constant 0 : index
    %17 = vector.load %arg7[%c0_15, %c0_16] : memref<1x128xf32, #tpu.memory_space<vmem>>, vector<1x128xf32>
    %18 = vector.broadcast %17 : vector<1x128xf32> to vector<8x128xf32>
    %19 = arith.addf %16, %18 : vector<8x128xf32>
    %c0_17 = arith.constant 0 : index
    %c0_18 = arith.constant 0 : index
    %20 = vector.load %arg8[%c0_17, %c0_18] : memref<1x128xf32, #tpu.memory_space<vmem>>, vector<1x128xf32>
    %cst_19 = arith.constant -5.000000e+00 : f32
    %cst_20 = arith.constant 2.000000e+00 : f32
    %21 = vector.broadcast %cst_19 : f32 to vector<1x128xf32>
    %22 = arith.maximumf %21, %20 : vector<1x128xf32>
    %23 = vector.broadcast %cst_20 : f32 to vector<1x128xf32>
    %24 = arith.minimumf %23, %22 : vector<1x128xf32>
    %25 = math.exp %24 : vector<1x128xf32>
    %c0_21 = arith.constant 0 : index
    %c0_22 = arith.constant 0 : index
    %26 = vector.load %arg9[%c0_21, %c0_22] : memref<8x256xf32, #tpu.memory_space<vmem>>, vector<8x128xf32>
    tpu.vector_store %arg9[%c0_21, %c0_22], %19 {strides = array<i32>} : memref<8x256xf32, #tpu.memory_space<vmem>>, vector<8x128xf32>,
    %27 = vector.shape_cast %25 : vector<1x128xf32> to vector<1x128xf32>
    %28 = vector.broadcast %27 : vector<1x128xf32> to vector<8x128xf32>
    %c0_23 = arith.constant 0 : index
    %c128 = arith.constant 128 : index
    %29 = vector.load %arg9[%c0_23, %c128] : memref<8x256xf32, #tpu.memory_space<vmem>>, vector<8x128xf32>
    tpu.vector_store %arg9[%c0_23, %c128], %28 {strides = array<i32>} : memref<8x256xf32, #tpu.memory_space<vmem>>, vector<8x128xf32>,
    return
  }
  func.func @transform_0(%arg0: i32) -> (i32, i32) {
    %c0_i32 = arith.constant 0 : i32
    %c0_i32_0 = arith.constant 0 : i32
    return %arg0, %c0_i32 : i32, i32
  }
  func.func @transform_1(%arg0: i32) -> (i32, i32) {
    %c0_i32 = arith.constant 0 : i32
    %c0_i32_0 = arith.constant 0 : i32
    %c0_i32_1 = arith.constant 0 : i32
    return %c0_i32, %c0_i32_0 : i32, i32
  }
  func.func @transform_2(%arg0: i32) -> (i32, i32) {
    %c0_i32 = arith.constant 0 : i32
    %c0_i32_0 = arith.constant 0 : i32
    %c0_i32_1 = arith.constant 0 : i32
    return %c0_i32, %c0_i32_0 : i32, i32
  }
  func.func @transform_3(%arg0: i32) -> (i32, i32) {
    %c0_i32 = arith.constant 0 : i32
    %c0_i32_0 = arith.constant 0 : i32
    %c0_i32_1 = arith.constant 0 : i32
    return %c0_i32, %c0_i32_0 : i32, i32
  }
  func.func @transform_4(%arg0: i32) -> (i32, i32) {
    %c0_i32 = arith.constant 0 : i32
    %c0_i32_0 = arith.constant 0 : i32
    %c0_i32_1 = arith.constant 0 : i32
    return %c0_i32, %c0_i32_0 : i32, i32
  }
  func.func @transform_5(%arg0: i32) -> (i32, i32) {
    %c0_i32 = arith.constant 0 : i32
    %c0_i32_0 = arith.constant 0 : i32
    %c0_i32_1 = arith.constant 0 : i32
    return %c0_i32, %c0_i32_0 : i32, i32
  }
  func.func @transform_6(%arg0: i32) -> (i32, i32) {
    %c0_i32 = arith.constant 0 : i32
    %c0_i32_0 = arith.constant 0 : i32
    %c0_i32_1 = arith.constant 0 : i32
    return %c0_i32, %c0_i32_0 : i32, i32
  }
  func.func @transform_7(%arg0: i32) -> (i32, i32) {
    %c0_i32 = arith.constant 0 : i32
    %c0_i32_0 = arith.constant 0 : i32
    %c0_i32_1 = arith.constant 0 : i32
    return %c0_i32, %c0_i32_0 : i32, i32
  }
  func.func @transform_8(%arg0: i32) -> (i32, i32) {
    %c0_i32 = arith.constant 0 : i32
    %c0_i32_0 = arith.constant 0 : i32
    return %arg0, %c0_i32 : i32, i32
  }
}

</mosaic_0001>

<bundles_post_ra>
// kernel: tpu_custom_call.1
= control target key start
LH: loop header
LB: loop body
LE: loop exit
PB: predicated region body
PF: predicated region fallthrough
CT: control target
= control target key end

     0   :  { %13 = vsyncpa [#allocation3], 0  ;;  %s1663_s0 = inlined_call_operand.hbm [shape: f32[16,128], index: 0, kind: input, shape index: {}]   ;;  %s1664_s1 = inlined_call_operand.hbm [shape: f32[128,128], index: 1, kind: input, shape index: {}]   ;;  %s1665_s2 = inlined_call_operand.vmem [shape: f32[1,128], index: 2, kind: input, shape index: {}]   ;;  %s1666_s3 = inlined_call_operand.hbm [shape: f32[128,128], index: 3, kind: input, shape index: {}]   ;;  %s1667_s4 = inlined_call_operand.vmem [shape: f32[1,128], index: 4, kind: input, shape index: {}]   ;;  %s1668_s5 = inlined_call_operand.hbm [shape: f32[128,128], index: 5, kind: input, shape index: {}]   ;;  %s1669_s6 = inlined_call_operand.vmem [shape: f32[1,128], index: 6, kind: input, shape index: {}]   ;;  %s1670_s7 = inlined_call_operand.vmem [shape: f32[1,128], index: 7, kind: input, shape index: {}]   ;;  %s1671_s8 = inlined_call_operand.hbm [shape: f32[16,256], index: 8, kind: output, shape index: {}]  }
   0x1   :  { %15 = vsyncpa [#allocation3 + $0x1], 0 }
   0x2   :  { %16 = vsyncpa [#allocation6], 0 }
   0x3   :  { %17 = vsyncpa [#allocation9], 0 }
   0x4   :  { %18 = vsyncpa [#allocation4], 0 }
   0x5   :  { %20 = vsyncpa [#allocation4 + $0x1], 0  ;;  %s1354_s27 = smov 0   ;;  %s1356_s28 = smov 0  }
   0x6   :  { %s1358_s29 = smov 0   ;;  %s1360_s30 = smov 0  }
   0x7 LB: > { %1677 = sst [smem:[#allocation15_spill]] %s1285_s27  ;;  %s1375_s9 = sadd.s32 4294967295, %s1297_s30   ;;  %s1297_s30 = sphi %s1360_s30, %s1700_s30   ;;  %s1293_s29 = sphi %s1358_s29, %s1699_s29   ;;  %s1289_s28 = sphi %s1356_s28, %s1698_s28   ;;  %s1285_s27 = sphi %s1354_s27, %s1697_s27  }
   0x8   : > { %s774_s10 = sadd.s32 4294967294, %s1297_s30   ;;  %p46_p0 = scmp.ne.s32.totalorder %s1289_s28, %s1285_s27 }
   0x9   : > { %p1672_p1 = scmp.eq.s32.totalorder %s1375_s9, 0  ;;  %p223_p3 = scmp.eq.s32.totalorder %s774_s10, 1 }
   0xa   : > { %p775_p5 = scmp.ge.s32.totalorder %s1297_s30, 1  ;;  %p230_p7 = scmp.lt.s32.totalorder %s1297_s30, 3 }
   0xb   : > { %p1384_p4 = por %p1672_p1, %p46_p0  ;;  %p1389_p6 = por %p223_p3, %p46_p0 }
   0xc   : > { %p1394_p8 = pnand %p775_p5, %p230_p7  ;;  %s1299_s14 = smov [#allocation5]  }
   0xd   : > { %s1678_s11 = scalar_select %p1384_p4, 1, 0 }
   0xe   : > { %s1679_s12 = scalar_select %p1389_p6, 1, 0 }
   0xf   : > { %s1681_s13 = scalar_select %p1394_p8, 1, 0 }
  0x10   : > { %1680 = sst [smem:[#allocation16_spill]] %s1679_s12  ;;  %s242_s15 = sshll.u32 %s1299_s14, 4  ;;  %s1398_s15 = int_to_ptr.vmem [resolvable:$true] %s242_s15 }
  0x11   : > { %p1041_p9 = pneg %p1394_p8  ;;  %s1300_s17 = smov [#allocation7]  }
  0x12   : > { %s258_s18 = sshll.u32 %s1300_s17, 4  ;;  %s1301_s19 = smov [#allocation8]   ;;  %s1409_s18 = int_to_ptr.vmem [resolvable:$true] %s258_s18 }
  0x13   : > { %p1405_p11 = pnand %p1041_p9, %p1672_p1  ;;  %s1411_s20 = sshll.u32 %s1301_s19, 4  ;;  %s275_s20 = int_to_ptr.vmem [resolvable:$true] %s1411_s20 }
  0x14   : > { %s1109_s23 = scalar_lea.hbm %s1664_s1, 2048 }
  0x15   : > { %p1110_p12 = scmp.ne.s32.totalorder %s1664_s1, %s1109_s23  ;;  %p1421_p13 = pneg %p1405_p11 }
  0x16   : > { %p1116_p5 = scmp.lt.u32.totalorder %s1109_s23, %s1664_s1 }
  0x17   : > { %p1112_p0 = pnand %p1421_p13, %p1110_p12 }
  0x19   : > { %p1113_p3 = pneg %p1112_p0 }
  0x1b   : > { %p1118_p7 = pnand %p1116_p5, %p1113_p3 }
  0x1d   : > { %1121 = shalt.err (!%p1118_p7)
}
  0x1e   : > { %s1122_s17 = scalar_lea.vmem %s1398_s15, 2048  ;;  %p1130_p2 = scmp.lt.s32.totalorder %s1398_s15, %s1398_s15 }
  0x1f   : > { %p1123_p9 = scmp.ne.s32.totalorder %s1398_s15, %s1122_s17  ;;  %p1131_p6 = scmp.lt.s32.totalorder %s1122_s17, %s1122_s17 }
  0x21   : > { %p1125_p10 = pnand %p1123_p9, %p1421_p13  ;;  %p1132_p12 = por %p1131_p6, %p1130_p2 }
  0x23   : > { %p1126_p1 = pneg %p1125_p10 }
  0x25   : > { %p1133_p0 = pnand %p1132_p12, %p1126_p1 }
  0x27   : > { %1136 = shalt.err (!%p1133_p0)
}
  0x28   : > { %s1302_s19 = smov 128   ;;  %s1303_s21 = smov 8  }
  0x29   : > { %1044 = dma.hbm_to_vmem [thread:$0]  (!%p1405_p11), %s1664_s1, 2048, %s1398_s15, [#allocation6], %s1302_s19, %s1302_s19, %s1303_s21  }
  0x2a   : > { %s1137_s10 = scalar_lea.hbm %s1666_s3, 2048 }
  0x2b   : > { %p1138_p1 = scmp.ne.s32.totalorder %s1666_s3, %s1137_s10  ;;  %p1144_p10 = scmp.lt.u32.totalorder %s1137_s10, %s1666_s3 }
  0x2d   : > { %p1140_p2 = pnand %p1138_p1, %p1421_p13 }
  0x2f   : > { %p1141_p6 = pneg %p1140_p2 }
  0x31   : > { %p1146_p3 = pnand %p1144_p10, %p1141_p6 }
  0x33   : > { %1149 = shalt.err (!%p1146_p3)
}
  0x34   : > { %s1150_s15 = scalar_lea.vmem %s1409_s18, 2048  ;;  %p1158_p12 = scmp.lt.s32.totalorder %s1409_s18, %s1409_s18 }
  0x35   : > { %p1151_p5 = scmp.ne.s32.totalorder %s1409_s18, %s1150_s15  ;;  %p1159_p0 = scmp.lt.s32.totalorder %s1150_s15, %s1150_s15 }
  0x37   : > { %p1153_p7 = pnand %p1151_p5, %p1421_p13  ;;  %p1160_p1 = por %p1159_p0, %p1158_p12 }
  0x39   : > { %p1154_p9 = pneg %p1153_p7 }
  0x3b   : > { %p1161_p2 = pnand %p1160_p1, %p1154_p9 }
  0x3d   : > { %1164 = shalt.err (!%p1161_p2)
}
  0x3e   : > { %1047 = dma.hbm_to_vmem [thread:$0]  (!%p1405_p11), %s1666_s3, 2048, %s1409_s18, [#allocation6], %s1302_s19, %s1302_s19, %s1303_s21  }
  0x3f   : > { %s1165_s24 = scalar_lea.hbm %s1668_s5, 2048 }
  0x40   : > { %p1166_p6 = scmp.ne.s32.totalorder %s1668_s5, %s1165_s24  ;;  %p1172_p5 = scmp.lt.u32.totalorder %s1165_s24, %s1668_s5 }
  0x42   : > { %p1168_p10 = pnand %p1166_p6, %p1421_p13 }
  0x44   : > { %p1169_p3 = pneg %p1168_p10 }
  0x46   : > { %p1174_p7 = pnand %p1172_p5, %p1169_p3 }
  0x48   : > { %1177 = shalt.err (!%p1174_p7)
}
  0x49   : > { %s1178_s15 = scalar_lea.vmem %s275_s20, 2048  ;;  %p1186_p1 = scmp.lt.s32.totalorder %s275_s20, %s275_s20 }
  0x4a   : > { %p1179_p9 = scmp.ne.s32.totalorder %s275_s20, %s1178_s15  ;;  %p1187_p2 = scmp.lt.s32.totalorder %s1178_s15, %s1178_s15 }
  0x4c   : > { %p1181_p12 = pnand %p1179_p9, %p1421_p13  ;;  %p1188_p4 = por %p1187_p2, %p1186_p1 }
  0x4e   : > { %p1182_p0 = pneg %p1181_p12 }
  0x50   : > { %p1189_p8 = pnand %p1188_p4, %p1182_p0 }
  0x52   : > { %1192 = shalt.err (!%p1189_p8)
}
  0x53   : > { %1050 = dma.hbm_to_vmem [thread:$0]  (!%p1405_p11), %s1668_s5, 2048, %s275_s20, [#allocation9], %s1302_s19, %s1302_s19, %s1303_s21  }
  0x54   : > { %s1494_s26 = sadd.s32 1, %s1297_s30   ;;  %s33_s12 = sadd.s32 1, %s1293_s29 }
  0x55   : > { %s30_s16 = ssub.s32 %s1297_s30, %s1494_s26  ;;  %p40_p8 = scmp.ne.s32.totalorder %s1293_s29, %s1289_s28 }
  0x56   : > { %p31_p4 = scmp.eq.s32.totalorder %s30_s16, 0  ;;  %p41_p13 = scmp.eq.s32.totalorder %s1297_s30, 0 }
  0x57   : > { %p1062_p6 = scmp.lt.s32.totalorder %s1297_s30, 2  ;;  %p1684_p3 = scmp.eq.s32.totalorder %s1375_s9, 1 }
  0x58   : > { %s1504_s22 = scalar_select %p31_p4, %s1293_s29, %s33_s12  }
  0x59   : > { %p42_p10 = por %p41_p13, %p40_p8  ;;  %p1508_p5 = por %p1684_p3, %p40_p8 }
  0x5a   : > { %s294_s24 = sand.u32 1, %s1293_s29   ;;  %s781_s25 = sshll.u32 %s1297_s30, 7 }
  0x5b   : > { %s780_s20 = sshll.u32 %s294_s24, 3  ;;  %s1517_s10 = scalar_lea.hbm %s1663_s0, %s781_s25 }
  0x5c   : > { %s298_s14 = scalar_lea.vmem [#allocation2], %s780_s20  ;;  %p1519_p11 = pnand %p1062_p6, %p42_p10 }
  0x5d   : > { %s305_s17 = sshll.u32 %s298_s14, 4  ;;  %s295_s18 = scalar_lea.sflag [#allocation3], %s294_s24  ;;  %s1523_s17 = int_to_ptr.vmem [resolvable:$true] %s305_s17 }
  0x5e   : > { %s1193_s27 = scalar_lea.hbm %s1517_s10, 128  ;;  %p1195_p9 = pneg %p1519_p11 }
  0x5f   : > { %p1194_p7 = scmp.ne.s32.totalorder %s1517_s10, %s1193_s27  ;;  %s1198_s25 = scalar_lea.hbm %s1663_s0, 256 }
  0x60   : > { %p1199_p1 = scmp.lt.u32.totalorder %s1517_s10, %s1663_s0  ;;  %p1200_p2 = scmp.lt.u32.totalorder %s1198_s25, %s1193_s27 }
  0x61   : > { %p1196_p12 = pnand %p1195_p9, %p1194_p7  ;;  %p1202_p8 = scmp.lt.u32.totalorder %s1193_s27, %s1517_s10 }
  0x62   : > { %p1201_p4 = por %p1200_p2, %p1199_p1 }
  0x63   : > { %p1197_p0 = pneg %p1196_p12 }
  0x64   : > { %p1203_p13 = por %p1202_p8, %p1201_p4 }
  0x66   : > { %p1204_p6 = pnand %p1203_p13, %p1197_p0 }
  0x68   : > { %1207 = shalt.err (!%p1204_p6)
}
  0x69   : > { %s1208_s24 = scalar_lea.vmem %s1523_s17, 128  ;;  %s1304_s21 = smov [#allocation2]  }
  0x6a   : > { %p1209_p10 = scmp.ne.s32.totalorder %s1523_s17, %s1208_s24  ;;  %s1213_s14 = sshll.u32 %s1304_s21, 4  ;;  %s1214_s14 = int_to_ptr.vmem [resolvable:$false] %s1213_s14 }
  0x6b   : > { %s1215_s16 = scalar_lea.vmem %s1214_s14, 256  ;;  %p1216_p12 = scmp.lt.s32.totalorder %s1523_s17, %s1214_s14 }
  0x6c   : > { %p1211_p3 = pnand %p1209_p10, %p1195_p9  ;;  %p1217_p1 = scmp.lt.s32.totalorder %s1215_s16, %s1208_s24 }
  0x6e   : > { %p1212_p7 = pneg %p1211_p3  ;;  %p1218_p2 = por %p1217_p1, %p1216_p12 }
  0x70   : > { %p1219_p4 = pnand %p1218_p2, %p1212_p7 }
  0x72   : > { %1222 = shalt.err (!%p1219_p4)
}
  0x73   : > { %1054 = dma.hbm_to_vmem [thread:$0]  (!%p1519_p11), %s1517_s10, 128, %s1523_s17, %s295_s18  }
  0x74   : > { %p1687_p0 = scmp.ne.s32.totalorder %s1681_s13, 0 }
  0x75   : > { %s1553_s27 = sand.u32 (!%p1687_p0), 1, %s1289_s28   ;;  %p1688_p9 = scmp.ne.s32.totalorder (!%p1687_p0), %s1678_s11, 0 }
  0x76   : > { %314 = sbr.rel (%p1687_p0) target bundleno = 828 (0x33c), region = 52  ;;  %s783_s12 = sshll.u32 (!%p1687_p0), %s1553_s27, 3 }
  0x77   : > { %s317_s25 = scalar_lea.sflag (!%p1687_p0), [#allocation3], %s1553_s27  ;;  %s1557_s20 = scalar_lea.vmem (!%p1687_p0), [#allocation2], %s783_s12 }
  0x7d   : > { %1268 = dma.done.wait (%p1688_p9), %s317_s25, 128  }
  0x7e   : > { %1270 = vsyncadd (%p1688_p9), %s317_s25, 4294967168  ;;  %p1689_p11 = scmp.eq.s32.totalorder %s1375_s9, 0 }
  0x80   : > { %1272 = dma.done.wait (%p1689_p11), [#allocation6], 4096   ;;  %p1690_p8 = pmov %p1689_p11 }
  0x82   : > { %1274 = vsyncadd (%p1690_p8), [#allocation6], 4294963200  ;;  %p1691_p13 = pmov %p1690_p8 }
  0x83   : > { %p1692_p6 = pmov %p1690_p8 }
  0x84   : > { %1276 = dma.done.wait (%p1691_p13), [#allocation9], 2048  }
  0x85   : > { %1278 = vsyncadd (%p1692_p6), [#allocation9], 4294965248  ;;  %v1305_v0 = vmov 0.0|0.0   ;;  %vm1306_vm0 = vmmov 0   ;;  %v1307_v1 = vmov 0.0   ;;  %v366_v2 = vld [vmem:[#allocation5] sm:$0xff] }
  0x86   : > { %953 = vmatprep.subr.bf16.mxu0 %v1305_v0  ;;  %880 = vmatprep.mubr.msk.f32.mxu0 %vm1306_vm0, %v1307_v1  ;;  %v367_v3 = vld [vmem:[#allocation5 + $0x8] sm:$0xff]  ;;  %v368_v4 = vld [vmem:[#allocation5 + $0x10] sm:$0xff]  ;;  %v369_v6 = vld [vmem:[#allocation5 + $0x18] sm:$0xff]  ;;  %s787_s19 = sshll.u32 %s1553_s27, 4  ;;  %s796_s16 = sshll.u32 %s1375_s9, 8 }
  0x87   : > { %977 = vmatprep.subr.bf16.mxu1 %v1305_v0  ;;  %915 = vmatprep.mubr.msk.f32.mxu1 %vm1306_vm0, %v1307_v1  ;;  %v954_v5 = vpack.c.bf16 %v367_v3, %v366_v2  ;;  %v957_v7 = vpack.c.bf16 %v369_v6, %v368_v4  ;;  %v370_v8 = vld [vmem:[#allocation5 + $0x20] sm:$0xff]  ;;  %v371_v9 = vld [vmem:[#allocation5 + $0x28] sm:$0xff]  ;;  %v462_v12 = vld [vmem:[#allocation7 + $0x10] sm:$0xff]  ;;  %s364_s24 = scalar_lea.vmem [#allocation10], %s787_s19  ;;  %s1619_s11 = scalar_lea.hbm %s1671_s8, %s796_s16 }
  0x88   : > { %v460_v10 = vld [vmem:[#allocation7] sm:$0xff]  ;;  %v461_v11 = vld [vmem:[#allocation7 + $0x8] sm:$0xff]  ;;  %v463_v13 = vld [vmem:[#allocation7 + $0x18] sm:$0xff]  ;;  %v960_v14 = vpack.c.bf16 %v371_v9, %v370_v8  ;;  %s675_s12 = sshll.u32 %s364_s24, 4  ;;  %s661_s13 = scalar_lea.sflag [#allocation4], %s1553_s27  ;;  %s1621_s12 = int_to_ptr.vmem [resolvable:$true] %s675_s12 }
  0x89   : > { %955 = vmatpush3.bf16.msra.mxu0 %v954_v5  ;;  %v978_v15 = vpack.c.bf16 %v461_v11, %v460_v10  ;;  %v372_v16 = vld [vmem:[#allocation5 + $0x30] sm:$0xff]  ;;  %v373_v17 = vld [vmem:[#allocation5 + $0x38] sm:$0xff]  ;;  %v981_v18 = vpack.c.bf16 %v463_v13, %v462_v12  ;;  %v464_v19 = vld [vmem:[#allocation7 + $0x20] sm:$0xff]  ;;  %s1223_s10 = scalar_lea.vmem %s1621_s12, 256  ;;  %s1308_s9 = smov [#allocation10]  }
  0x8a   : > { %956 = vmatprep.subr.bf16.mxu0 %v1305_v0  ;;  %v465_v20 = vld [vmem:[#allocation7 + $0x28] sm:$0xff]  ;;  %v963_v21 = vpack.c.bf16 %v373_v17, %v372_v16  ;;  %v374_v22 = vld [vmem:[#allocation5 + $0x40] sm:$0xff]  ;;  %v466_v25 = vld [vmem:[#allocation7 + $0x30] sm:$0xff]  ;;  %p1224_p10 = scmp.ne.s32.totalorder %s1621_s12, %s1223_s10  ;;  %s1227_s17 = sshll.u32 %s1308_s9, 4  ;;  %s1228_s17 = int_to_ptr.vmem [resolvable:$false] %s1227_s17 }
  0x8b   : > { %979 = vmatpush3.bf16.msra.mxu1 %v978_v15  ;;  %v375_v23 = vld [vmem:[#allocation5 + $0x48] sm:$0xff]  ;;  %v984_v24 = vpack.c.bf16 %v465_v20, %v464_v19  ;;  %v467_v26 = vld [vmem:[#allocation7 + $0x38] sm:$0xff]  ;;  %v376_v28 = vld [vmem:[#allocation5 + $0x50] sm:$0xff]  ;;  %s1229_s15 = scalar_lea.vmem %s1228_s17, 512  ;;  %p1230_p12 = scmp.lt.s32.totalorder %s1621_s12, %s1228_s17 }
  0x8c   : > { %980 = vmatprep.subr.bf16.mxu1 %v1305_v0  ;;  %v966_v27 = vpack.c.bf16 %v375_v23, %v374_v22  ;;  %v377_v29 = vld [vmem:[#allocation5 + $0x58] sm:$0xff]  ;;  %v987_v30 = vpack.c.bf16 %v467_v26, %v466_v25  ;;  %v468_v31 = vld [vmem:[#allocation7 + $0x40] sm:$0xff]  ;;  %v469_v32 = vld [vmem:[#allocation7 + $0x48] sm:$0xff]  ;;  %v654_v25 = vlaneseq  ;;  %p1225_p3 = pnand %p1224_p10, %p1508_p5  ;;  %p1231_p1 = scmp.lt.s32.totalorder %s1229_s15, %s1223_s10 }
  0x8d   : > { %958 = vmatpush3.bf16.msra.mxu0 %v957_v7  ;;  %v969_v33 = vpack.c.bf16 %v377_v29, %v376_v28  ;;  %v378_v34 = vld [vmem:[#allocation5 + $0x60] sm:$0xff]  ;;  %v379_v35 = vld [vmem:[#allocation5 + $0x68] sm:$0xff]  ;;  %v990_v36 = vpack.c.bf16 %v469_v32, %v468_v31  ;;  %v470_v37 = vld [vmem:[#allocation7 + $0x50] sm:$0xff] }
  0x8e   : > { %959 = vmatprep.subr.bf16.mxu0 %v1305_v0  ;;  %v471_v38 = vld [vmem:[#allocation7 + $0x58] sm:$0xff]  ;;  %v972_v39 = vpack.c.bf16 %v379_v35, %v378_v34  ;;  %v380_v40 = vld [vmem:[#allocation5 + $0x70] sm:$0xff]  ;;  %v472_v43 = vld [vmem:[#allocation7 + $0x60] sm:$0xff]  ;;  %v655_v26 = vshrl.u32 %v654_v25, 7  ;;  %p1226_p7 = pneg %p1225_p3  ;;  %p1232_p2 = por %p1231_p1, %p1230_p12 }
  0x8f   : > { %982 = vmatpush3.bf16.msra.mxu1 %v981_v18  ;;  %v381_v41 = vld [vmem:[#allocation5 + $0x78] sm:$0xff]  ;;  %v993_v42 = vpack.c.bf16 %v471_v38, %v470_v37  ;;  %v473_v44 = vld [vmem:[#allocation7 + $0x68] sm:$0xff]  ;;  %v474_v48 = vld [vmem:[#allocation7 + $0x70] sm:$0xff] }
  0x90   : > { %983 = vmatprep.subr.bf16.mxu1 %v1305_v0  ;;  %v975_v45 = vpack.c.bf16 %v381_v41, %v380_v40  ;;  %v996_v46 = vpack.c.bf16 %v473_v44, %v472_v43  ;;  %v365_v47 = vld [vmem:[%s1557_s20] sm:$0xff]  ;;  %v554_v51 = vld [vmem:[#allocation8] sm:$0xff]  ;;  %v555_v52 = vld [vmem:[#allocation8 + $0x8] sm:$0xff]  ;;  %p1233_p4 = pnand %p1232_p2, %p1226_p7 }
  0x91   : > { %961 = vmatpush3.bf16.msra.mxu0 %v960_v14  ;;  %v475_v49 = vld [vmem:[#allocation7 + $0x78] sm:$0xff]  ;;  %v556_v53 = vld [vmem:[#allocation8 + $0x10] sm:$0xff]  ;;  %v1002_v54 = vpack.c.bf16 %v555_v52, %v554_v51  ;;  %v558_v57 = vld [vmem:[#allocation8 + $0x20] sm:$0xff] }
  0x92   : > { %962 = vmatprep.subr.bf16.mxu0 %v1305_v0  ;;  %v999_v50 = vpack.c.bf16 %v475_v49, %v474_v48  ;;  %v557_v55 = vld [vmem:[#allocation8 + $0x18] sm:$0xff]  ;;  %v559_v58 = vld [vmem:[#allocation8 + $0x28] sm:$0xff]  ;;  %v560_v60 = vld [vmem:[#allocation8 + $0x30] sm:$0xff] }
  0x93   : > { %985 = vmatpush3.bf16.msra.mxu1 %v984_v24  ;;  %v1005_v56 = vpack.c.bf16 %v557_v55, %v556_v53  ;;  %v1008_v59 = vpack.c.bf16 %v559_v58, %v558_v57  ;;  %v561_v61 = vld [vmem:[#allocation8 + $0x38] sm:$0xff]  ;;  %v562_v63 = vld [vmem:[#allocation8 + $0x40] sm:$0xff]  ;;  %v564_v3 = vld [vmem:[#allocation8 + $0x50] sm:$0xff] }
  0x94   : > { %986 = vmatprep.subr.bf16.mxu1 %v1305_v0  ;;  %v1011_v62 = vpack.c.bf16 %v561_v61, %v560_v60  ;;  %v565_v4 = vld [vmem:[#allocation8 + $0x58] sm:$0xff]  ;;  %v566_v6 = vld [vmem:[#allocation8 + $0x60] sm:$0xff]  ;;  %v567_v7 = vld [vmem:[#allocation8 + $0x68] sm:$0xff] }
  0x95   : > { %964 = vmatpush3.bf16.msra.mxu0 %v963_v21  ;;  %v1017_v5 = vpack.c.bf16 %v565_v4, %v564_v3  ;;  %v1020_v8 = vpack.c.bf16 %v567_v7, %v566_v6  ;;  %v788_v9 = vld [vmem:[%s1665_s2] ss:$0 sm:$0xff]  ;;  %v569_v15 = vld [vmem:[#allocation8 + $0x78] sm:$0xff] }
  0x96   : > { %965 = vmatprep.subr.bf16.mxu0 %v1305_v0  ;;  %v568_v14 = vld [vmem:[#allocation8 + $0x70] sm:$0xff] }
  0x97   : > { %988 = vmatpush3.bf16.msra.mxu1 %v987_v30  ;;  %v1023_v16 = vpack.c.bf16 %v569_v15, %v568_v14  ;;  %v789_v17 = vld [vmem:[%s1667_s4] ss:$0 sm:$0xff] }
  0x98   : > { %989 = vmatprep.subr.bf16.mxu1 %v1305_v0  ;;  %v647_v21 = vld [vmem:[%s1670_s7] sm:$0x1] }
  0x99   : > { %967 = vmatpush3.bf16.msra.mxu0 %v966_v27  ;;  %v648_v22 = vmax.f32 %v647_v21, -5.0  ;;  %v656_v27 = vsub.s32 0, %v655_v26  ;;  %v790_v30 = vld [vmem:[%s1669_s6] ss:$0 sm:$0xff] }
  0x9a   : > { %968 = vmatprep.subr.bf16.mxu0 %v1305_v0 }
  0x9b   : > { %991 = vmatpush3.bf16.msra.mxu1 %v990_v36  ;;  %v649_v23 = vmin.f32 %v648_v22, 2.0 }
  0x9c   : > { %992 = vmatprep.subr.bf16.mxu1 %v1305_v0 }
  0x9d   : > { %970 = vmatpush3.bf16.msra.mxu0 %v969_v33  ;;  %v650_v24 = vmul.f32 1.442695, %v649_v23 }
  0x9e   : > { %971 = vmatprep.subr.bf16.mxu0 %v1305_v0 }
  0x9f   : > { %994 = vmatpush3.bf16.msra.mxu1 %v993_v42  ;;  %1107 = vpow2.f32 %v650_v24 }
  0xa0   : > { %995 = vmatprep.subr.bf16.mxu1 %v1305_v0 }
  0xa1   : > { %973 = vmatpush3.bf16.msra.mxu0 %v972_v39 }
  0xa2   : > { %974 = vmatprep.subr.bf16.mxu0 %v1305_v0 }
  0xa3   : > { %997 = vmatpush3.bf16.msra.mxu1 %v996_v46 }
  0xa4   : > { %998 = vmatprep.subr.bf16.mxu1 %v1305_v0 }
  0xa5   : > { %976 = vmatpush3.bf16.msra.mxu0 %v975_v45 }
  0xa6   : > { %1001 = vmatprep.subr.bf16.mxu0 %v1305_v0 }
  0xa7   : > { %1000 = vmatpush3.bf16.msra.mxu1 %v999_v50 }
  0xa8   : > { %881 = vmatmul.mubr.f32.vlgmr.msra.gmra.mrb[0].mxu0 %v365_v47 }
  0xa9   : > { %950 = vmatprep.mubr.msk.f32.mxu0 %vm1306_vm0, %v1307_v1  ;;  %1003 = vmatpush3.bf16.msra.mxu0 %v1002_v54  ;;  %v563_v1 = vld [vmem:[#allocation8 + $0x48] sm:$0xff]  ;;  %v1108_v28 = vpop.eup %1107 }
  0xaa   : > { %1004 = vmatprep.subr.bf16.mxu0 %v1305_v0  ;;  %v1014_v2 = vpack.c.bf16 %v563_v1, %v562_v63  ;;  %v657_v29 = vrot.slane %v1108_v28, %v656_v27 }
  0xac   : > { %659 = vst [vmem:[%s364_s24 + $0x8] sm:$0xff] %v657_v29 }
  0xad   : > { %1006 = vmatpush3.bf16.msra.mxu0 %v1005_v56 }
  0xae   : > { %1007 = vmatprep.subr.bf16.mxu0 %v1305_v0 }
  0xb1   : > { %1009 = vmatpush3.bf16.msra.mxu0 %v1008_v59 }
  0xb2   : > { %1010 = vmatprep.subr.bf16.mxu0 %v1305_v0 }
  0xb5   : > { %1012 = vmatpush3.bf16.msra.mxu0 %v1011_v62 }
  0xb6   : > { %1013 = vmatprep.subr.bf16.mxu0 %v1305_v0 }
  0xb9   : > { %1015 = vmatpush3.bf16.msra.mxu0 %v1014_v2 }
  0xba   : > { %1016 = vmatprep.subr.bf16.mxu0 %v1305_v0 }
  0xbd   : > { %1018 = vmatpush3.bf16.msra.mxu0 %v1017_v5 }
  0xbe   : > { %1019 = vmatprep.subr.bf16.mxu0 %v1305_v0 }
  0xc1   : > { %1021 = vmatpush3.bf16.msra.mxu0 %v1020_v8 }
  0xc2   : > { %1022 = vmatprep.subr.bf16.mxu0 %v1305_v0 }
  0xc5   : > { %1024 = vmatpush3.bf16.msra.mxu0 %v1023_v16 }
 0x17b   : > { %v455_v10 = vpop.f32.mrb[0].mxu0 }
 0x17c   : > { %v456_v11 = vadd.f32 %v788_v9, %v455_v10  ;;  %v882_v12 = vpop.f32.mrb[1].mxu0 }
 0x17e   : > { %v459_v13 = vmax.f32 %v456_v11, 0.0 }
 0x180   : > { %916 = vmatmul.mubr.f32.vlgmr.msra.gmra.mrb[0].mxu1 %v459_v13 }
 0x253   : > { %v549_v18 = vpop.f32.mrb[0].mxu1 }
 0x254   : > { %v550_v0 = vadd.f32 %v789_v17, %v549_v18  ;;  %v917_v19 = vpop.f32.mrb[1].mxu1 }
 0x256   : > { %v553_v20 = vmax.f32 %v550_v0, 0.0 }
 0x258   : > { %951 = vmatmul.mubr.f32.vlgmr.msra.gmra.mrb[2].mxu0 %v553_v20 }
 0x32b   : > { %v643_v31 = vpop.f32.mrb[2].mxu0 }
 0x32c   : > { %v644_v32 = vadd.f32 %v790_v30, %v643_v31  ;;  %v952_v33 = vpop.f32.mrb[3].mxu0 }
 0x32e   : > { %652 = vst [vmem:[%s364_s24] sm:$0xff] %v644_v32 }
 0x32f   : > { %1236 = shalt.err (!%p1233_p4)
}
 0x330   : > { %s1237_s27 = scalar_lea.hbm %s1619_s11, 256  ;;  %s1241_s24 = scalar_lea.hbm %s1671_s8, 512 }
 0x331   : > { %p1238_p0 = scmp.ne.s32.totalorder %s1619_s11, %s1237_s27  ;;  %p1242_p8 = scmp.lt.u32.totalorder %s1619_s11, %s1671_s8 }
 0x332   : > { %p1243_p13 = scmp.lt.u32.totalorder %s1241_s24, %s1237_s27  ;;  %p1245_p10 = scmp.lt.u32.totalorder %s1237_s27, %s1619_s11 }
 0x333   : > { %p1239_p9 = pnand %p1238_p0, %p1508_p5 }
 0x334   : > { %p1244_p6 = por %p1243_p13, %p1242_p8 }
 0x335   : > { %p1240_p11 = pneg %p1239_p9 }
 0x336   : > { %p1246_p3 = por %p1245_p10, %p1244_p6 }
 0x338   : > { %p1247_p7 = pnand %p1246_p3, %p1240_p11 }
 0x33a   : > { %1250 = shalt.err (!%p1247_p7)
}
 0x33b   : > { %1039 = dma.vmem_to_hbm [thread:$0]  (%p1508_p5), %s1621_s12, 256, %s1619_s11, %s661_s13  }
 0x33c PF: > { %s1693_s16 = sld [smem:[#allocation15_spill]]  ;;  %s1694_s25 = sld [smem:[#allocation16_spill]] }
 0x33d   : > { %p1696_p1 = scmp.ge.s32.totalorder %s1297_s30, 2 }
 0x342   : > { %s687_s20 = sand.u32 1, %s1693_s16   ;;  %p1695_p12 = scmp.ne.s32.totalorder %s1694_s25, 0 }
 0x343   : > { %s688_s10 = scalar_lea.sflag [#allocation4], %s687_s20 }
 0x344   : > { %p1056_p2 = pnand %p1696_p1, %p1695_p12 }
 0x346   : > { %1280 = dma.done.wait (!%p1056_p2), %s688_s10, 256  }
 0x347   : > { %1282 = vsyncadd (!%p1056_p2), %s688_s10, 4294967040  ;;  %p23_p4 = scmp.ge.s32.totalorder %s1494_s26, 4   ;;  %s1697_s27 = smov %s1289_s28 }
 0x348   : > { %s1698_s28 = smov %s1293_s29  ;;  %s1699_s29 = smov %s1504_s22 }
 0x349   : > { %s1700_s30 = smov %s1494_s26  ;;  %25 = sbr.rel (!%p23_p4) target bundleno = 7 (0x7), region = 109 }
 0x350   :  { %693 = vsyncpa [#allocation3], 1 }
 0x351   :  { %695 = vsyncpa [#allocation3 + $0x1], 1 }
 0x352   :  { %696 = vsyncpa [#allocation6], 1 }
 0x353   :  { %697 = vsyncpa [#allocation9], 1 }
 0x354   :  { %698 = vsyncpa [#allocation4], 1 }
 0x355   :  { %700 = vsyncpa [#allocation4 + $0x1], 1 }

</bundles_post_ra>
